<compile_context>
chip_gen: v5e
topology: v5e:2x2
jax: 0.10.0
libtpu: 0.0.40
codegen_flags: <defaults>
</compile_context>

<pallas_src>
import functools

import jax
import jax.numpy as jnp
from jax.experimental import pallas as pl
from jax.experimental.pallas import tpu as pltpu


def _attention_kernel(x_ref, m_ref,
                      wq_ref, bq_ref,
                      wkv_ref, bkv_ref,
                      wo_ref, bo_ref,
                      o_ref, *, bt, s_q, s_kv, c):
    x = x_ref[...]            # (bt*s_q,  c)   batch-folded query rows
    m = m_ref[...]            # (bt*s_kv, c)   batch-folded memory rows

    # Projections on folded rows (single wide MXU matmuls, f32 accumulation).
    # The depth scale is already folded into wq/bq.
    q = jnp.dot(x, wq_ref[...], preferred_element_type=jnp.float32) + bq_ref[...]
    kv = jnp.dot(m, wkv_ref[...], preferred_element_type=jnp.float32) + bkv_ref[...]
    k = kv[:, :c]
    v = kv[:, c:]

    # Per-batch attention.  S_q/S_kv are multiples of 8, so these reshapes are
    # pure sublane-tile relabelings (no data movement).
    qb = q.reshape(bt, s_q, c)
    kb = k.reshape(bt, s_kv, c)
    vb = v.reshape(bt, s_kv, c)

    # Batched contraction over the feature dim -- no explicit transpose of k.
    logits = jnp.einsum('bqd,bkd->bqk', qb, kb,
                        preferred_element_type=jnp.float32)      # (bt, s_q, s_kv)
    logits = logits - jnp.max(logits, axis=-1, keepdims=True)
    p = jnp.exp(logits)
    attn = p * pl.reciprocal(jnp.sum(p, axis=-1, keepdims=True), approx=True)

    sel = jnp.einsum('bqk,bkd->bqd', attn, vb,
                     preferred_element_type=jnp.float32)         # (bt, s_q, c)
    sel = sel.reshape(bt * s_q, c)

    # Output projection on folded rows; wo/bo are padded to a 128-lane multiple
    # so this store is lane-dense (unmasked vst).
    out = jnp.dot(sel, wo_ref[...], preferred_element_type=jnp.float32) + bo_ref[...]
    o_ref[...] = out.astype(o_ref.dtype)


def prepare_attention_weights(wq, bq, wk, bk, wv, bv, wo, bo, in_channels):
    """One-time host-side weight transform (NOT per forward call).

    - Folds the depth scale C^-0.5 into Wq / bq.
    - Fuses Wk|Wv into one (C, 2C) weight and bk|bv into one (1, 2C) bias.
    - Zero-pads Wo / bo so the kernel's output width is a multiple of 128
      lanes; the wrapper strips the padding.
    Weights are stored as (in, out), i.e. transposed vs. torch.nn.Linear.
    """
    scale = float(in_channels) ** -0.5
    wq_s = wq * scale
    bq_s = bq * scale
    wkv = jnp.concatenate([wk, wv], axis=1)
    bkv = jnp.concatenate([bk, bv], axis=1)
    c_out = wo.shape[1]
    c_pad = ((c_out + 127) // 128) * 128
    wo_p = jnp.pad(wo, ((0, 0), (0, c_pad - c_out)))
    bo_p = jnp.pad(bo, ((0, 0), (0, c_pad - c_out)))
    return dict(wq=wq_s, bq=bq_s, wkv=wkv, bkv=bkv, wo=wo_p, bo=bo_p, c_out=c_out)


def _pick_bt(batch, s_q, rows_target=256):
    """Batches per grid step: aim for ~rows_target folded M rows (>=128 MXU
    rows when B allows), while keeping Bt a divisor of B."""
    bt = max(1, min(batch, rows_target // max(s_q, 1)))
    while batch % bt:
        bt -= 1
    return bt


def attention_base(x, memory, params):
    """Pallas equivalent of AttentionBase.forward.

    x:      (B, S_q,  C)
    memory: (B, S_kv, C)
    params: output of prepare_attention_weights().
    """
    B, S_q, C = x.shape
    _, S_kv, _ = memory.shape
    wq, bq = params["wq"], params["bq"]
    wkv, bkv = params["wkv"], params["bkv"]
    wo, bo = params["wo"], params["bo"]
    C_out = params["c_out"]
    C_pad = wo.shape[1]

    # Per-batch blocks must be sublane-aligned so the in-kernel batch split is
    # a free relayout.
    assert S_q % 8 == 0 and S_kv % 8 == 0, "S_q and S_kv must be multiples of 8"

    # Fold batch into the matmul M dimension (layout plumbing, not compute).
    x2 = x.reshape(B * S_q, C)
    m2 = memory.reshape(B * S_kv, C)

    bt = _pick_bt(B, S_q)
    grid = (B // bt,)

    kernel = functools.partial(_attention_kernel, bt=bt, s_q=S_q, s_kv=S_kv, c=C)

    out = pl.pallas_call(
        kernel,
        out_shape=jax.ShapeDtypeStruct((B * S_q, C_pad), x.dtype),
        grid_spec=pl.GridSpec(
            grid=grid,
            in_specs=[
                pl.BlockSpec((bt * S_q, C), lambda i: (i, 0)),     # x (folded)
                pl.BlockSpec((bt * S_kv, C), lambda i: (i, 0)),    # memory (folded)
                pl.BlockSpec((C, C), lambda i: (0, 0)),            # Wq (pre-scaled)
                pl.BlockSpec((1, C), lambda i: (0, 0)),            # bq (pre-scaled)
                pl.BlockSpec((C, 2 * C), lambda i: (0, 0)),        # Wk|Wv fused
                pl.BlockSpec((1, 2 * C), lambda i: (0, 0)),        # bk|bv fused
                pl.BlockSpec((C, C_pad), lambda i: (0, 0)),        # Wo (lane-padded)
                pl.BlockSpec((1, C_pad), lambda i: (0, 0)),        # bo (lane-padded)
            ],
            out_specs=pl.BlockSpec((bt * S_q, C_pad), lambda i: (i, 0)),
        ),
        compiler_params=pltpu.CompilerParams(
            dimension_semantics=("parallel",),
        ),
    )(x2, m2, wq, bq, wkv, bkv, wo, bo)

    # Strip lane padding and restore (B, S_q, C_out).
    return out[:, :C_out].reshape(B, S_q, C_out)


def _attention_ref(x, memory, wq, bq, wk, bk, wv, bv, wo, bo):
    """Pure-JAX reference matching the PyTorch module semantics."""
    scale = float(x.shape[2]) ** -0.5
    q = (x @ wq + bq) * scale
    k = memory @ wk + bk
    v = memory @ wv + bv
    logit = jnp.einsum("bqc,bkc->bqk", q, k)
    attn = jax.nn.softmax(logit, axis=-1)
    sel = jnp.einsum("bqk,bkc->bqc", attn, v)
    return sel @ wo + bo


if __name__ == "__main__":
    key = jax.random.PRNGKey(0)
    B, S_q, S_kv, C, C_out = 2, 8, 8, 32, 16

    keys = jax.random.split(key, 11)
    x = jax.random.normal(keys[0], (B, S_q, C), dtype=jnp.float32)
    memory = jax.random.normal(keys[1], (B, S_kv, C), dtype=jnp.float32)

    def lin(kw, kb, n_in, n_out):
        w = jax.random.normal(kw, (n_in, n_out), dtype=jnp.float32) / jnp.sqrt(n_in)
        b = jax.random.normal(kb, (1, n_out), dtype=jnp.float32) * 0.1
        return w, b

    wq, bq = lin(keys[2], keys[3], C, C)
    wk, bk = lin(keys[4], keys[5], C, C)
    wv, bv = lin(keys[6], keys[7], C, C)
    wo, bo = lin(keys[8], keys[9], C, C_out)

    # One-time weight preparation (scale fold, K|V fusion, lane padding).
    params = prepare_attention_weights(wq, bq, wk, bk, wv, bv, wo, bo, C)

    y = attention_base(x, memory, params)
    jax.block_until_ready(y)

    y_ref = _attention_ref(x, memory, wq, bq, wk, bk, wv, bv, wo, bo)
    assert y.shape == (B, S_q, C_out), y.shape
    assert y.dtype == x.dtype, y.dtype
    # Tolerance accounts for the approx (EUP) reciprocal in the softmax denom.
    assert jnp.allclose(y, y_ref, atol=2e-3, rtol=2e-3), "mismatch vs reference"

    print("KERNEL_OK")
</pallas_src>

<mosaic_0001>
module attributes {stable_mosaic.version = 11 : i64} {
  func.func @_attention_kernel(%arg0: i32, %arg1: memref<16x32xf32, #tpu.memory_space<vmem>>, %arg2: memref<16x32xf32, #tpu.memory_space<vmem>>, %arg3: memref<32x32xf32, #tpu.memory_space<vmem>>, %arg4: memref<1x32xf32, #tpu.memory_space<vmem>>, %arg5: memref<32x64xf32, #tpu.memory_space<vmem>>, %arg6: memref<1x64xf32, #tpu.memory_space<vmem>>, %arg7: memref<32x128xf32, #tpu.memory_space<vmem>>, %arg8: memref<1x128xf32, #tpu.memory_space<vmem>>, %arg9: memref<16x128xf32, #tpu.memory_space<vmem>>) attributes {dimension_semantics = [#tpu.dimension_semantics<parallel>], iteration_bounds = array<i64: 1>, scalar_prefetch = 0 : i64, scratch_operands = 0 : i64, tpu.core_type = #tpu.core_type<tc>, window_params = [{transform_indices = @transform_0, window_bounds = array<i64: 16, 32>}, {transform_indices = @transform_1, window_bounds = array<i64: 16, 32>}, {pipeline_mode = #tpu.pipeline_mode<synchronous>, transform_indices = @transform_2, window_bounds = array<i64: 32, 32>}, {pipeline_mode = #tpu.pipeline_mode<synchronous>, transform_indices = @transform_3, window_bounds = array<i64: 1, 32>}, {pipeline_mode = #tpu.pipeline_mode<synchronous>, transform_indices = @transform_4, window_bounds = array<i64: 32, 64>}, {pipeline_mode = #tpu.pipeline_mode<synchronous>, transform_indices = @transform_5, window_bounds = array<i64: 1, 64>}, {pipeline_mode = #tpu.pipeline_mode<synchronous>, transform_indices = @transform_6, window_bounds = array<i64: 32, 128>}, {pipeline_mode = #tpu.pipeline_mode<synchronous>, transform_indices = @transform_7, window_bounds = array<i64: 1, 128>}, {transform_indices = @transform_8, window_bounds = array<i64: 16, 128>}]} {
    %c0 = arith.constant 0 : index
    %c0_0 = arith.constant 0 : index
    %0 = vector.load %arg1[%c0, %c0_0] : memref<16x32xf32, #tpu.memory_space<vmem>>, vector<16x32xf32>
    %c0_1 = arith.constant 0 : index
    %c0_2 = arith.constant 0 : index
    %1 = vector.load %arg2[%c0_1, %c0_2] : memref<16x32xf32, #tpu.memory_space<vmem>>, vector<16x32xf32>
    %c0_3 = arith.constant 0 : index
    %c0_4 = arith.constant 0 : index
    %2 = vector.load %arg3[%c0_3, %c0_4] : memref<32x32xf32, #tpu.memory_space<vmem>>, vector<32x32xf32>
    %cst = arith.constant dense<0.000000e+00> : vector<16x32xf32>
    %3 = tpu.matmul %0, %2, %cst {dimension_numbers = #tpu.dot_dimension_numbers<[1], [0], [0], [1], [0, 0, 1, 1], [], []>} : vector<16x32xf32>, vector<32x32xf32>, vector<16x32xf32> -> vector<16x32xf32>
    %c0_5 = arith.constant 0 : index
    %c0_6 = arith.constant 0 : index
    %4 = vector.load %arg4[%c0_5, %c0_6] : memref<1x32xf32, #tpu.memory_space<vmem>>, vector<1x32xf32>
    %5 = vector.broadcast %4 : vector<1x32xf32> to vector<16x32xf32>
    %6 = arith.addf %3, %5 : vector<16x32xf32>
    %c0_7 = arith.constant 0 : index
    %c0_8 = arith.constant 0 : index
    %7 = vector.load %arg5[%c0_7, %c0_8] : memref<32x64xf32, #tpu.memory_space<vmem>>, vector<32x64xf32>
    %cst_9 = arith.constant dense<0.000000e+00> : vector<16x64xf32>
    %8 = tpu.matmul %1, %7, %cst_9 {dimension_numbers = #tpu.dot_dimension_numbers<[1], [0], [0], [1], [0, 0, 1, 1], [], []>} : vector<16x32xf32>, vector<32x64xf32>, vector<16x64xf32> -> vector<16x64xf32>
    %c0_10 = arith.constant 0 : index
    %c0_11 = arith.constant 0 : index
    %9 = vector.load %arg6[%c0_10, %c0_11] : memref<1x64xf32, #tpu.memory_space<vmem>>, vector<1x64xf32>
    %10 = vector.broadcast %9 : vector<1x64xf32> to vector<16x64xf32>
    %11 = arith.addf %8, %10 : vector<16x64xf32>
    %12 = vector.extract_strided_slice %11 {offsets = [0, 0], sizes = [16, 32], strides = [1, 1]} : vector<16x64xf32> to vector<16x32xf32>
    %13 = vector.extract_strided_slice %11 {offsets = [0, 32], sizes = [16, 32], strides = [1, 1]} : vector<16x64xf32> to vector<16x32xf32>
    %14 = vector.shape_cast %6 : vector<16x32xf32> to vector<2x8x32xf32>
    %15 = vector.shape_cast %12 : vector<16x32xf32> to vector<2x8x32xf32>
    %16 = vector.shape_cast %13 : vector<16x32xf32> to vector<2x8x32xf32>
    "tpu.trace_start"() <{level = 10 : i32, message = "bqd,bkd->bqk"}> : () -> ()
    %cst_12 = arith.constant dense<0.000000e+00> : vector<2x8x8xf32>
    %17 = tpu.matmul %14, %15, %cst_12 {dimension_numbers = #tpu.dot_dimension_numbers<[2], [2], [1], [1], [0, 0, 0, 1, 1, 1], [0], [0]>} : vector<2x8x32xf32>, vector<2x8x32xf32>, vector<2x8x8xf32> -> vector<2x8x8xf32>
    "tpu.trace_stop"() : () -> ()
    %cst_13 = arith.constant dense<0xFF800000> : vector<2x8xf32>
    %18 = vector.multi_reduction <maximumf>, %17, %cst_13 [2] : vector<2x8x8xf32> to vector<2x8xf32>
    %19 = vector.shape_cast %18 : vector<2x8xf32> to vector<2x8x1xf32>
    %20 = vector.broadcast %19 : vector<2x8x1xf32> to vector<2x8x8xf32>
    %21 = arith.subf %17, %20 : vector<2x8x8xf32>
    %22 = math.exp %21 : vector<2x8x8xf32>
    %cst_14 = arith.constant dense<0.000000e+00> : vector<2x8xf32>
    %23 = vector.multi_reduction <add>, %22, %cst_14 [2] : vector<2x8x8xf32> to vector<2x8xf32>
    %24 = vector.shape_cast %23 : vector<2x8xf32> to vector<2x8x1xf32>
    %25 = tpu.reciprocal %24 {approx = true} : vector<2x8x1xf32> -> vector<2x8x1xf32>
    %26 = vector.broadcast %25 : vector<2x8x1xf32> to vector<2x8x8xf32>
    %27 = arith.mulf %22, %26 : vector<2x8x8xf32>
    "tpu.trace_start"() <{level = 10 : i32, message = "bqk,bkd->bqd"}> : () -> ()
    %cst_15 = arith.constant dense<0.000000e+00> : vector<2x8x32xf32>
    %28 = tpu.matmul %27, %16, %cst_15 {dimension_numbers = #tpu.dot_dimension_numbers<[2], [1], [1], [2], [0, 0, 0, 1, 1, 2], [0], [0]>} : vector<2x8x8xf32>, vector<2x8x32xf32>, vector<2x8x32xf32> -> vector<2x8x32xf32>
    "tpu.trace_stop"() : () -> ()
    %29 = vector.shape_cast %28 : vector<2x8x32xf32> to vector<16x32xf32>
    %c0_16 = arith.constant 0 : index
    %c0_17 = arith.constant 0 : index
    %30 = vector.load %arg7[%c0_16, %c0_17] : memref<32x128xf32, #tpu.memory_space<vmem>>, vector<32x128xf32>
    %cst_18 = arith.constant dense<0.000000e+00> : vector<16x128xf32>
    %31 = tpu.matmul %29, %30, %cst_18 {dimension_numbers = #tpu.dot_dimension_numbers<[1], [0], [0], [1], [0, 0, 1, 1], [], []>} : vector<16x32xf32>, vector<32x128xf32>, vector<16x128xf32> -> vector<16x128xf32>
    %c0_19 = arith.constant 0 : index
    %c0_20 = arith.constant 0 : index
    %32 = vector.load %arg8[%c0_19, %c0_20] : memref<1x128xf32, #tpu.memory_space<vmem>>, vector<1x128xf32>
    %33 = vector.broadcast %32 : vector<1x128xf32> to vector<16x128xf32>
    %34 = arith.addf %31, %33 : vector<16x128xf32>
    %c0_21 = arith.constant 0 : index
    %c0_22 = arith.constant 0 : index
    %35 = vector.load %arg9[%c0_21, %c0_22] : memref<16x128xf32, #tpu.memory_space<vmem>>, vector<16x128xf32>
    tpu.vector_store %arg9[%c0_21, %c0_22], %34 {strides = array<i32>} : memref<16x128xf32, #tpu.memory_space<vmem>>, vector<16x128xf32>,
    return
  }
  func.func @transform_0(%arg0: i32) -> (i32, i32) {
    %c0_i32 = arith.constant 0 : i32
    %c0_i32_0 = arith.constant 0 : i32
    return %arg0, %c0_i32 : i32, i32
  }
  func.func @transform_1(%arg0: i32) -> (i32, i32) {
    %c0_i32 = arith.constant 0 : i32
    %c0_i32_0 = arith.constant 0 : i32
    return %arg0, %c0_i32 : i32, i32
  }
  func.func @transform_2(%arg0: i32) -> (i32, i32) {
    %c0_i32 = arith.constant 0 : i32
    %c0_i32_0 = arith.constant 0 : i32
    %c0_i32_1 = arith.constant 0 : i32
    return %c0_i32, %c0_i32_0 : i32, i32
  }
  func.func @transform_3(%arg0: i32) -> (i32, i32) {
    %c0_i32 = arith.constant 0 : i32
    %c0_i32_0 = arith.constant 0 : i32
    %c0_i32_1 = arith.constant 0 : i32
    return %c0_i32, %c0_i32_0 : i32, i32
  }
  func.func @transform_4(%arg0: i32) -> (i32, i32) {
    %c0_i32 = arith.constant 0 : i32
    %c0_i32_0 = arith.constant 0 : i32
    %c0_i32_1 = arith.constant 0 : i32
    return %c0_i32, %c0_i32_0 : i32, i32
  }
  func.func @transform_5(%arg0: i32) -> (i32, i32) {
    %c0_i32 = arith.constant 0 : i32
    %c0_i32_0 = arith.constant 0 : i32
    %c0_i32_1 = arith.constant 0 : i32
    return %c0_i32, %c0_i32_0 : i32, i32
  }
  func.func @transform_6(%arg0: i32) -> (i32, i32) {
    %c0_i32 = arith.constant 0 : i32
    %c0_i32_0 = arith.constant 0 : i32
    %c0_i32_1 = arith.constant 0 : i32
    return %c0_i32, %c0_i32_0 : i32, i32
  }
  func.func @transform_7(%arg0: i32) -> (i32, i32) {
    %c0_i32 = arith.constant 0 : i32
    %c0_i32_0 = arith.constant 0 : i32
    %c0_i32_1 = arith.constant 0 : i32
    return %c0_i32, %c0_i32_0 : i32, i32
  }
  func.func @transform_8(%arg0: i32) -> (i32, i32) {
    %c0_i32 = arith.constant 0 : i32
    %c0_i32_0 = arith.constant 0 : i32
    return %arg0, %c0_i32 : i32, i32
  }
}

</mosaic_0001>

<bundles_post_ra>
// kernel: tpu_custom_call.1
= control target key start
LH: loop header
LB: loop body
LE: loop exit
PB: predicated region body
PF: predicated region fallthrough
CT: control target
= control target key end

     0   :  { %13 = vsyncpa [#allocation3], 0  ;;  %s673_s0 = inlined_call_operand.hbm [shape: f32[16,32], index: 0, kind: input, shape index: {}]   ;;  %s674_s1 = inlined_call_operand.hbm [shape: f32[16,32], index: 1, kind: input, shape index: {}]   ;;  %s675_s2 = inlined_call_operand.hbm [shape: f32[32,32], index: 2, kind: input, shape index: {}]   ;;  %s676_s3 = inlined_call_operand.vmem [shape: f32[1,32], index: 3, kind: input, shape index: {}]   ;;  %s677_s4 = inlined_call_operand.hbm [shape: f32[32,64], index: 4, kind: input, shape index: {}]   ;;  %s678_s5 = inlined_call_operand.vmem [shape: f32[1,64], index: 5, kind: input, shape index: {}]   ;;  %s679_s6 = inlined_call_operand.hbm [shape: f32[32,128], index: 6, kind: input, shape index: {}]   ;;  %s680_s7 = inlined_call_operand.vmem [shape: f32[1,128], index: 7, kind: input, shape index: {}]   ;;  %s681_s8 = inlined_call_operand.hbm [shape: f32[16,128], index: 8, kind: output, shape index: {}]  }
   0x1   :  { %14 = vsyncpa [#allocation6], 0 }
   0x2   :  { %15 = vsyncpa [#allocation9], 0 }
   0x3   :  { %16 = vsyncpa [#allocation4], 0  ;;  %s34_s29 = sshll.u32 %s674_s1, 4  ;;  %s558_s30 = smov [#allocation5]   ;;  %s35_s29 = int_to_ptr.hbm [resolvable:$true] %s34_s29 }
   0x4   :  { %s36_s9 = sshll.u32 %s558_s30, 4  ;;  %s62_s12 = sshll.u32 %s677_s4, 4  ;;  %s37_s9 = int_to_ptr.vmem [resolvable:$true] %s36_s9  ;;  %s63_s12 = int_to_ptr.hbm [resolvable:$true] %s62_s12 }
   0x5   :  { %s559_s13 = smov 128   ;;  %s560_s14 = smov 8  }
   0x6   :  { %42 = dma.hbm_to_vmem [thread:$0]  %s35_s29, 256, %s37_s9, [#allocation6], %s559_s13, %s559_s13, %s560_s14  }
   0x7   :  { %s561_s15 = smov [#allocation8]   ;;  %s21_s1 = sshll.u32 %s673_s0, 4  ;;  %s22_s1 = int_to_ptr.hbm [resolvable:$true] %s21_s1 }
   0x8   :  { %s64_s16 = sshll.u32 %s561_s15, 4  ;;  %s47_s20 = sshll.u32 %s675_s2, 4  ;;  %s65_s16 = int_to_ptr.vmem [resolvable:$true] %s64_s16  ;;  %s48_s20 = int_to_ptr.hbm [resolvable:$true] %s47_s20 }
   0x9   :  { %70 = dma.hbm_to_vmem [thread:$0]  %s63_s12, 512, %s65_s16, [#allocation9], %s559_s13, %s559_s13, %s560_s14  }
   0xa   :  { %s562_s21 = smov [#allocation2]   ;;  %s563_s23 = smov [#allocation7]  }
   0xb   :  { %s23_s22 = sshll.u32 %s562_s21, 4  ;;  %s49_s0 = sshll.u32 %s563_s23, 4  ;;  %s24_s22 = int_to_ptr.vmem [resolvable:$true] %s23_s22  ;;  %s50_s0 = int_to_ptr.vmem [resolvable:$true] %s49_s0 }
   0xc   :  { %29 = dma.hbm_to_vmem [thread:$0]  %s22_s1, 256, %s24_s22, [#allocation3], %s559_s13, %s559_s13, %s560_s14  }
   0xd   :  { %s77_s26 = sshll.u32 %s679_s6, 4  ;;  %s564_s2 = smov [#allocation10]   ;;  %s78_s26 = int_to_ptr.hbm [resolvable:$true] %s77_s26 }
   0xe   :  { %55 = dma.hbm_to_vmem [thread:$0]  %s48_s20, 512, %s50_s0, [#allocation6], %s559_s13, %s559_s13, %s560_s14  }
   0xf   :  { %s79_s27 = sshll.u32 %s564_s2, 4  ;;  %s80_s27 = int_to_ptr.vmem [resolvable:$true] %s79_s27 }
  0x10   :  { %85 = dma.hbm_to_vmem [thread:$0]  %s78_s26, 512, %s80_s27, [#allocation9], %s559_s13, %s559_s13, %s560_s14  }
  0x11   :  { %550 = dma.done.wait [#allocation3], 256  }
  0x12   :  { %551 = vsyncadd [#allocation3], 4294967040 }
  0x13   :  { %552 = dma.done.wait [#allocation6], 768  }
  0x14   :  { %553 = vsyncadd [#allocation6], 4294966528 }
  0x15   :  { %554 = dma.done.wait [#allocation9], 1024  }
  0x16   :  { %555 = vsyncadd [#allocation9], 4294966272  ;;  %v153_v0 = vld [vmem:[#allocation8 + $0x18] sm:$0xff]  ;;  %v152_v1 = vld [vmem:[#allocation8 + $0x10] sm:$0xff]  ;;  %vm120_vm0 = vcmask 261120   ;;  %s565_s9 = smov 96  }
  0x17   :  { %v115_v2 = vld [vmem:[#allocation7 + $0x18] sm:$0xff]  ;;  %176 = vmatpush.msra.mxu1 %v153_v0  ;;  %v114_v3 = vld [vmem:[#allocation7 + $0x10] sm:$0xff]  ;;  %v151_v4 = vld [vmem:[#allocation8 + $0x8] sm:$0xff]  ;;  %vm239_vm1 = vcmask 64512   ;;  %s566_s10 = smov [#allocation11]   ;;  %s359_s16 = sshll.u32 %s681_s8, 4  ;;  %s360_s16 = int_to_ptr.hbm [resolvable:$true] %s359_s16 }
  0x18   :  { %139 = vmatpush.msra.mxu0 %v115_v2  ;;  %v113_v5 = vld [vmem:[#allocation7 + $0x8] sm:$0xff]  ;;  %v150_v6 = vld [vmem:[#allocation8] sm:$0xff]  ;;  %v110_v8 = vld [vmem:[#allocation5] sm:$0xff]  ;;  %s357_s11 = sshll.u32 %s566_s10, 4  ;;  %s358_s11 = int_to_ptr.vmem [resolvable:$true] %s357_s11 }
  0x19   :  { %177 = vmatpush.msra.mxu1 %v152_v1  ;;  %v112_v7 = vld [vmem:[#allocation7] sm:$0xff]  ;;  %v111_v10 = vld [vmem:[#allocation5 + $0x8] sm:$0xff]  ;;  %v109_v11 = vld [vmem:[#allocation2 + $0x8] sm:$0xff] }
  0x1a   :  { %140 = vmatpush.msra.mxu0 %v114_v3  ;;  %v108_v9 = vld [vmem:[#allocation2] sm:$0xff]  ;;  %v317_v38 = vld [vmem:[#allocation10 + $0x18] sm:$0xff]  ;;  %v316_v39 = vld [vmem:[#allocation10 + $0x10] sm:$0xff] }
  0x1b   :  { %178 = vmatpush.msra.mxu1 %v151_v4  ;;  %v395_v12 = vld [vmem:[%s678_s5] ss:$0 sm:$0xff]  ;;  %v315_v40 = vld [vmem:[#allocation10 + $0x8] sm:$0xff] }
  0x1c   :  { %141 = vmatpush.msra.mxu0 %v113_v5  ;;  %v396_v13 = vld [vmem:[%s676_s3] ss:$0 sm:$0xff] }
  0x1d   :  { %179 = vmatpush.msra.mxu1 %v150_v6  ;;  %v314_v47 = vld [vmem:[#allocation10] sm:$0xff] }
  0x1e   :  { %142 = vmatpush.msra.mxu0 %v112_v7  ;;  %376 = vmatmul.msk.f32.vlgmr.msra.gmra.mxu1 %vm120_vm0, %v110_v8  ;;  %v397_v50 = vld [vmem:[%s680_s7] ss:$0 sm:$0xff] }
  0x1f   :  { %374 = vmatmul.msk.f32.vlgmr.msra.gmra.mxu0 %vm120_vm0, %v108_v9 }
  0x26   :  { %377 = vmatmul.msk.f32.gmra.mxu1 %vm120_vm0, %v111_v10 }
  0x27   :  { %375 = vmatmul.msk.f32.gmra.mxu0 %vm120_vm0, %v109_v11 }
  0x9b   :  { %v181_v14 = vpop.f32.mrf.mxu1 }
  0x9c   :  { %v144_v15 = vpop.f32.mrf.mxu0  ;;  %v182_v16 = vadd.f32 %v395_v12, %v181_v14 }
  0x9d   :  { %v145_v17 = vadd.f32 %v396_v13, %v144_v15 }
  0x9e   :  { %262 = vrot.lane.b32.xlu2 %v182_v16, %s565_s9  ;;  %378 = vmatpush.xpose.msk.msra.mxu3 %vm120_vm0, %v182_v16 }
  0xa1   :  { %379 = vmatmul.msk.f32.vlgmr.msra.gmra.mxu3 %vm120_vm0, %v145_v17 }
  0xa3   :  { %v184_v18 = vpop.f32.mrf.mxu1 }
  0xa4   :  { %v147_v19 = vpop.f32.mrf.mxu0  ;;  %v185_v20 = vadd.f32 %v395_v12, %v184_v18 }
  0xa5   :  { %v148_v21 = vadd.f32 %v396_v13, %v147_v19 }
  0xa6   :  { %288 = vrot.lane.b32.xlu2 %v185_v20, %s565_s9  ;;  %380 = vmatpush.xpose.msk.msrb.mxu3 %vm120_vm0, %v185_v20 }
  0xa9   :  { %381 = vmatmul.msk.f32.vlgmr.msrb.gmra.mxu3 %vm120_vm0, %v148_v21 }
  0xf8   :  { %v263_v22 = vpop.permute.xlu2 %262 }
  0xf9   :  { %283 = vmatpush.msra.mxu2 %v263_v22 }
  0xfb   :  { %340 = vmatpush.msrb.mxu2 %v317_v38 }
  0xfd   :  { %341 = vmatpush.msrb.mxu2 %v316_v39 }
  0xff   :  { %342 = vmatpush.msrb.mxu2 %v315_v40 }
 0x100   :  { %v289_v23 = vpop.permute.xlu2 %288 }
 0x101   :  { %309 = vmatpush.msra.mxu3 %v289_v23  ;;  %343 = vmatpush.msrb.mxu2 %v314_v47 }
 0x124   :  { %v210_v24 = vpop.f32.mrf.mxu3 }
 0x125   :  { %v240_v25 = vsel %vm239_vm1, %v210_v24, -inf }
 0x126   :  { %241 = vmax.xlane.f32.xlu0 %v240_v25 }
 0x12c   :  { %v236_v26 = vpop.f32.mrf.mxu3 }
 0x12d   :  { %v243_v27 = vsel %vm239_vm1, %v236_v26, -inf }
 0x12e   :  { %244 = vmax.xlane.f32.xlu0 %v243_v27 }
 0x199   :  { %v242_v28 = vpop.xlane.xlu0 %241 }
 0x19a   :  { %v246_v29 = vsub.f32 %v210_v24, %v242_v28 }
 0x19c   :  { %v248_v30 = vmul.f32 1.442695, %v246_v29 }
 0x19e   :  { %398 = vpow2.f32 %v248_v30 }
 0x1a1   :  { %v245_v31 = vpop.xlane.xlu0 %244 }
 0x1a2   :  { %v247_v32 = vsub.f32 %v236_v26, %v245_v31 }
 0x1a4   :  { %v399_v33 = vpop.eup %398  ;;  %v250_v34 = vmul.f32 1.442695, %v247_v32 }
 0x1a5   :  { %v252_v35 = vsel %vm239_vm1, %v399_v33, 0.0 }
 0x1a6   :  { %400 = vpow2.f32 %v250_v34  ;;  %253 = vadd.xlane.f32.xlu1 %v252_v35 }
 0x1ac   :  { %v401_v36 = vpop.eup %400 }
 0x1ad   :  { %v255_v37 = vsel %vm239_vm1, %v401_v36, 0.0 }
 0x1ae   :  { %256 = vadd.xlane.f32.xlu1 %v255_v37 }
 0x219   :  { %v254_v41 = vpop.xlane.xlu1 %253 }
 0x21a   :  { %402 = vrcp.f32 %v254_v41 }
 0x220   :  { %v403_v42 = vpop.eup %402 }
 0x221   :  { %v257_v43 = vpop.xlane.xlu1 %256  ;;  %v260_v44 = vmul.f32 %v403_v42, %v399_v33 }
 0x222   :  { %404 = vrcp.f32 %v257_v43 }
 0x223   :  { %382 = vmatmul.msk.f32.vlgmr.msra.gmra.mxu2 %vm239_vm1, %v260_v44 }
 0x228   :  { %v405_v45 = vpop.eup %404 }
 0x229   :  { %v261_v46 = vmul.f32 %v405_v45, %v401_v36 }
 0x22b   :  { %383 = vmatmul.msk.f32.vlgmr.msra.gmra.mxu3 %vm239_vm1, %v261_v46 }
 0x2a6   :  { %v285_v48 = vpop.f32.mrf.mxu2 }
 0x2a7   :  { %384 = vmatmul.msk.f32.vlgmr.msrb.gmra.mxu2 %vm120_vm0, %v285_v48 }
 0x2ae   :  { %v311_v49 = vpop.f32.mrf.mxu3 }
 0x2af   :  { %385 = vmatmul.msk.f32.gmra.mxu2 %vm120_vm0, %v311_v49 }
 0x32a   :  { %v345_v51 = vpop.f32.mrf.mxu2 }
 0x32b   :  { %v346_v52 = vadd.f32 %v397_v50, %v345_v51 }
 0x32d   :  { %351 = vst [vmem:[#allocation11] sm:$0xff] %v346_v52 }
 0x332   :  { %v348_v53 = vpop.f32.mrf.mxu2 }
 0x333   :  { %v349_v54 = vadd.f32 %v397_v50, %v348_v53 }
 0x335   :  { %352 = vst [vmem:[#allocation11 + $0x8] sm:$0xff] %v349_v54 }
 0x336   :  { %365 = dma.vmem_to_hbm [thread:$0]  %s358_s11, 256, %s360_s16, [#allocation4], %s559_s13, %s559_s13, %s560_s14  }
 0x337   :  { %556 = dma.done.wait [#allocation4], 256  }
 0x338   :  { %557 = vsyncadd [#allocation4], 4294967040 }
 0x339   :  { %370 = vsyncpa [#allocation3], 1 }
 0x33a   :  { %371 = vsyncpa [#allocation6], 1 }
 0x33b   :  { %372 = vsyncpa [#allocation9], 1 }
 0x33c   :  { %373 = vsyncpa [#allocation4], 1 }

</bundles_post_ra>
